<compile_context>
chip_gen: v7x
topology: tpu7x:2x2x1
jax: 0.10.0
libtpu: 0.0.40
codegen_flags: <defaults>
</compile_context>

<pallas_src>
import functools
import math

import jax
import jax.numpy as jnp
from jax.experimental import pallas as pl
from jax.experimental.pallas import tpu as pltpu


# ----------------------------------------------------------------------------
# Tiled linear kernel:  y = x @ W^T,   x: (M, K), W: (O, K)  ->  y: (M, O)
# ----------------------------------------------------------------------------
def _linear_kernel(x_ref, w_ref, o_ref, acc_ref):
    @pl.when(pl.program_id(2) == 0)
    def _():
        acc_ref[...] = jnp.zeros(acc_ref.shape, acc_ref.dtype)

    # Contract K of x (axis 1) with K of W (axis 1) -> no weight transpose.
    acc_ref[...] += jax.lax.dot_general(
        x_ref[...], w_ref[...],
        dimension_numbers=(((1,), (1,)), ((), ())),
        preferred_element_type=jnp.float32)

    @pl.when(pl.program_id(2) == pl.num_programs(2) - 1)
    def _():
        o_ref[...] = acc_ref[...].astype(o_ref.dtype)


def _pick_tile(dim, pref, unit):
    """Largest multiple of `unit` that is <= pref and divides dim, else full dim."""
    if dim <= pref:
        return dim
    t = (pref // unit) * unit
    while t >= unit:
        if dim % t == 0:
            return t
        t -= unit
    return dim


def pallas_linear(x, w, *, tm=256, tn=256, tk=512):
    M, K = x.shape
    O, K2 = w.shape
    assert K == K2
    tm = _pick_tile(M, tm, 8)
    tn = _pick_tile(O, tn, 128)
    tk = _pick_tile(K, tk, 128)
    grid = (M // tm, O // tn, K // tk)
    return pl.pallas_call(
        _linear_kernel,
        grid_spec=pltpu.PrefetchScalarGridSpec(
            num_scalar_prefetch=0,
            grid=grid,
            in_specs=[
                pl.BlockSpec((tm, tk), lambda i, j, k: (i, k)),
                pl.BlockSpec((tn, tk), lambda i, j, k: (j, k)),
            ],
            out_specs=pl.BlockSpec((tm, tn), lambda i, j, k: (i, j)),
            scratch_shapes=[pltpu.VMEM((tm, tn), jnp.float32)],
        ),
        out_shape=jax.ShapeDtypeStruct((M, O), x.dtype),
        compiler_params=pltpu.CompilerParams(
            dimension_semantics=("parallel", "parallel", "arbitrary"),
            vmem_limit_bytes=32 * 1024 * 1024),
    )(x, w)


# ----------------------------------------------------------------------------
# Attention core.  Grid = (batch, heads, kv_tiles); flash-style online softmax.
# All leading batch/head dims are squeezed away by the BlockSpecs, so the
# kernel body is identical for the lane-packed and the head-major layouts:
#   q_ref:     (t,  eh)     head slice of fused Q/prior projection (pre-scaled)
#   k_ref:     (ts, eh)     head slice of fused K/V projection
#   v_ref:     (ts, eh)
#   pq_ref:    (t, p)       prior query (pre-scaled)              [optional]
#   prior_ref: (p, t, ts)   attention prior arranged (p, t, s)    [optional]
#   mask_ref:  (t, ts)      additive float mask                   [optional]
#   o_ref:     (t, eh)      head slice of the output
# ----------------------------------------------------------------------------
def _attn_kernel(*refs, has_prior, has_mask):
    it = iter(refs)
    q_ref = next(it)
    k_ref = next(it)
    v_ref = next(it)
    pq_ref = prior_ref = mask_ref = None
    if has_prior:
        pq_ref = next(it)
        prior_ref = next(it)
    if has_mask:
        mask_ref = next(it)
    o_ref = next(it)
    m_sc = next(it)
    l_sc = next(it)
    acc_sc = next(it)

    kv = pl.program_id(2)

    @pl.when(kv == 0)
    def _():
        m_sc[...] = jnp.full(m_sc.shape, -jnp.inf, m_sc.dtype)
        l_sc[...] = jnp.zeros(l_sc.shape, l_sc.dtype)
        acc_sc[...] = jnp.zeros(acc_sc.shape, acc_sc.dtype)

    q = q_ref[...]          # (t, eh)  -- scale already folded into weights
    k = k_ref[...]          # (ts, eh)
    v = v_ref[...]          # (ts, eh)

    # content logits on the MXU, contracting eh directly (no k transpose)
    logits = jax.lax.dot_general(
        q, k, dimension_numbers=(((1,), (1,)), ((), ())),
        preferred_element_type=jnp.float32)          # (t, ts)

    if has_prior:
        pq = pq_ref[...].astype(jnp.float32)         # (t, p) -- pre-scaled
        p_dim = pq_ref.shape[-1]
        for pp in range(p_dim):                      # small static unroll: VPU FMAs
            logits += pq[:, pp:pp + 1] * prior_ref[pp, :, :].astype(jnp.float32)

    if has_mask:
        logits += mask_ref[...].astype(jnp.float32)

    # ---- online softmax over kv tiles ----
    m_prev = m_sc[...]
    m_new = jnp.maximum(m_prev, jnp.max(logits, axis=-1, keepdims=True))
    alpha = jnp.exp(m_prev - m_new)
    pexp = jnp.exp(logits - m_new)
    l_sc[...] = alpha * l_sc[...] + jnp.sum(pexp, axis=-1, keepdims=True)
    acc_sc[...] = alpha * acc_sc[...] + jnp.dot(
        pexp.astype(v.dtype), v, preferred_element_type=jnp.float32)
    m_sc[...] = m_new

    @pl.when(kv == pl.num_programs(2) - 1)
    def _():
        o_ref[...] = (
            acc_sc[...] * pl.reciprocal(l_sc[...], approx=True)
        ).astype(o_ref.dtype)


def _attention_core(q_arr, k_arr, v_arr, pq, prior, mask, *, n, h, t, s, eh,
                    packed, v_head_off, kv_tile, out_dtype):
    ts = _pick_tile(s, kv_tile, 128)
    num_kv = s // ts
    has_prior = pq is not None
    has_mask = mask is not None

    if packed:
        # q/k/v are lane-dense (n, seq, features) slabs; pick head slices
        # directly along the feature axis.
        in_specs = [
            pl.BlockSpec((None, t, eh), lambda b, hd, kv_: (b, 0, hd)),
            pl.BlockSpec((None, ts, eh), lambda b, hd, kv_: (b, kv_, hd)),
            pl.BlockSpec((None, ts, eh),
                         lambda b, hd, kv_, off=v_head_off: (b, kv_, off + hd)),
        ]
        out_spec = pl.BlockSpec((None, t, eh), lambda b, hd, kv_: (b, 0, hd))
        out_shape = jax.ShapeDtypeStruct((n, t, h * eh), out_dtype)
    else:
        # Head-major fallback for eh % 128 != 0 (last block dim == full eh).
        in_specs = [
            pl.BlockSpec((None, None, t, eh), lambda b, hd, kv_: (b, hd, 0, 0)),
            pl.BlockSpec((None, None, ts, eh), lambda b, hd, kv_: (b, hd, kv_, 0)),
            pl.BlockSpec((None, None, ts, eh), lambda b, hd, kv_: (b, hd, kv_, 0)),
        ]
        out_spec = pl.BlockSpec((None, None, t, eh),
                                lambda b, hd, kv_: (b, hd, 0, 0))
        out_shape = jax.ShapeDtypeStruct((n, h, t, eh), out_dtype)

    inputs = [q_arr, k_arr, v_arr]
    if has_prior:
        p = pq.shape[-1]
        inputs += [pq, prior]
        in_specs += [
            pl.BlockSpec((None, None, t, p), lambda b, hd, kv_: (b, hd, 0, 0)),
            pl.BlockSpec((None, p, t, ts), lambda b, hd, kv_: (b, 0, 0, kv_)),
        ]
    if has_mask:
        inputs.append(mask)
        in_specs.append(pl.BlockSpec((None, t, ts), lambda b, hd, kv_: (b, 0, kv_)))

    return pl.pallas_call(
        functools.partial(_attn_kernel, has_prior=has_prior, has_mask=has_mask),
        grid_spec=pltpu.PrefetchScalarGridSpec(
            num_scalar_prefetch=0,
            grid=(n, h, num_kv),
            in_specs=in_specs,
            out_specs=out_spec,
            scratch_shapes=[
                pltpu.VMEM((t, 1), jnp.float32),    # running max
                pltpu.VMEM((t, 1), jnp.float32),    # running denominator
                pltpu.VMEM((t, eh), jnp.float32),   # running numerator
            ],
        ),
        out_shape=out_shape,
        compiler_params=pltpu.CompilerParams(
            dimension_semantics=("parallel", "parallel", "arbitrary"),
            vmem_limit_bytes=32 * 1024 * 1024),
    )(*inputs)


# ----------------------------------------------------------------------------
# Parameter init (xavier_uniform, matching torch.nn.init.xavier_uniform_)
# ----------------------------------------------------------------------------
def init_params(key, feature_dim, num_heads, prior_dim):
    def xavier(k, out_f, in_f):
        limit = math.sqrt(6.0 / (in_f + out_f))
        return jax.random.uniform(k, (out_f, in_f), jnp.float32, -limit, limit)

    k0, k1, k2, k3, k4 = jax.random.split(key, 5)
    params = {
        "wq": xavier(k0, feature_dim, feature_dim),
        "wk": xavier(k1, feature_dim, feature_dim),
        "wv": xavier(k2, feature_dim, feature_dim),
        "wo": xavier(k3, feature_dim, feature_dim),
    }
    if prior_dim > 0:
        params["wp"] = xavier(k4, prior_dim * num_heads, feature_dim)
    return params


# ----------------------------------------------------------------------------
# Forward pass (mirrors MultiheadAttention.forward, bias=False, dropout=0.0)
# ----------------------------------------------------------------------------
def multihead_attention(params, query_source, key_source, value_source=None,
                        attention_prior=None, attention_mask=None,
                        *, num_heads, prior_dim, kv_tile=512):
    if value_source is None:
        value_source = key_source
    n, t, e = query_source.shape
    s = key_source.shape[1]
    h = num_heads
    assert e % h == 0
    eh = e // h
    scale = 1.0 / math.sqrt(e / h + prior_dim)

    has_prior = attention_prior is not None
    has_mask = attention_mask is not None
    if has_mask:
        assert jnp.issubdtype(attention_mask.dtype, jnp.floating), \
            "attention_mask must be an additive float mask"

    # ---- fused projections; logit scale folded into the Q / prior weights ----
    if has_prior:
        p = attention_prior.shape[3]
        w_qp = jnp.concatenate([params["wq"], params["wp"]], axis=0) * scale
    else:
        p = 0
        w_qp = params["wq"] * scale
    qp2d = pallas_linear(query_source.reshape(n * t, e), w_qp)   # (n*t, e + h*p)

    fuse_kv = value_source is key_source
    if fuse_kv:
        w_kv = jnp.concatenate([params["wk"], params["wv"]], axis=0)
        kv2d = pallas_linear(key_source.reshape(n * s, e), w_kv)  # (n*s, 2e)
    else:
        k2d = pallas_linear(key_source.reshape(n * s, e), params["wk"])
        v2d = pallas_linear(value_source.reshape(n * s, e), params["wv"])

    pq = prior = None
    if has_prior:
        # Exact reproduction of the PyTorch `.view(t, n, h, p)` flat
        # reinterpretation of the (n, t, h*p) projection, then permute.
        pq = qp2d[:, e:].reshape(t, n, h, p)
        pq = jnp.transpose(pq, (1, 2, 0, 3))                     # (n, h, t, p)
        prior = jnp.transpose(attention_prior, (0, 3, 1, 2))     # (n, p, t, s)

    packed = (eh % 128 == 0)
    if packed:
        # Lane-dense path: head slices picked straight out of the fused slabs.
        q_arr = qp2d.reshape(n, t, e + h * p)
        if fuse_kv:
            kv_arr = kv2d.reshape(n, s, 2 * e)
            k_arr, v_arr, v_head_off = kv_arr, kv_arr, h
        else:
            k_arr = k2d.reshape(n, s, e)
            v_arr = v2d.reshape(n, s, e)
            v_head_off = 0
        attn_nte = _attention_core(
            q_arr, k_arr, v_arr, pq, prior, attention_mask,
            n=n, h=h, t=t, s=s, eh=eh, packed=True, v_head_off=v_head_off,
            kv_tile=kv_tile, out_dtype=query_source.dtype)       # (n, t, e)
    else:
        # Head-major fallback (small host-side reshuffle).
        q_arr = jnp.transpose(qp2d[:, :e].reshape(n, t, h, eh), (0, 2, 1, 3))
        if fuse_kv:
            k_arr = jnp.transpose(kv2d[:, :e].reshape(n, s, h, eh), (0, 2, 1, 3))
            v_arr = jnp.transpose(kv2d[:, e:].reshape(n, s, h, eh), (0, 2, 1, 3))
        else:
            k_arr = jnp.transpose(k2d.reshape(n, s, h, eh), (0, 2, 1, 3))
            v_arr = jnp.transpose(v2d.reshape(n, s, h, eh), (0, 2, 1, 3))
        attn = _attention_core(
            q_arr, k_arr, v_arr, pq, prior, attention_mask,
            n=n, h=h, t=t, s=s, eh=eh, packed=False, v_head_off=0,
            kv_tile=kv_tile, out_dtype=query_source.dtype)       # (n, h, t, eh)
        attn_nte = jnp.transpose(attn, (0, 2, 1, 3)).reshape(n, t, e)

    # `attn_nte` is (n, t, e) with heads packed along the feature axis
    # (identical to the PyTorch permute/reshape).
    out = pallas_linear(attn_nte.reshape(n * t, e), params["wo"]).reshape(n, t, e)
    return out


# ----------------------------------------------------------------------------
# Pure-JAX reference (direct transcription of the PyTorch forward)
# ----------------------------------------------------------------------------
def reference_forward(params, query_source, key_source, value_source,
                      attention_prior, attention_mask, *, num_heads, prior_dim):
    PREC = jax.lax.Precision.HIGHEST
    if value_source is None:
        value_source = key_source
    n, t, e = query_source.shape
    s = key_source.shape[1]
    h = num_heads
    eh = e // h
    scale = 1.0 / math.sqrt(e / h + prior_dim)

    query = jnp.matmul(query_source, params["wq"].T, precision=PREC).reshape(n, t, h, eh)
    key = jnp.matmul(key_source, params["wk"].T, precision=PREC).reshape(n, s, h, eh)
    value = jnp.matmul(value_source, params["wv"].T, precision=PREC).reshape(n, s, h, eh)
    query = jnp.transpose(query, (0, 2, 1, 3)).reshape(n * h, t, eh)
    key = jnp.transpose(key, (0, 2, 3, 1)).reshape(n * h, eh, s)
    value = jnp.transpose(value, (0, 2, 1, 3)).reshape(n * h, s, eh)
    logits = jnp.einsum("bte,bes->bts", query, key, precision=PREC)
    if attention_prior is not None:
        p = attention_prior.shape[3]
        prior_query = jnp.matmul(query_source, params["wp"].T,
                                 precision=PREC).reshape(t, n, h, p)
        prior_query = jnp.transpose(prior_query, (1, 2, 0, 3))
        logits = logits + jnp.einsum("nhtp,ntsp->nhts", prior_query, attention_prior,
                                     precision=PREC).reshape(n * h, t, s)
    logits = logits * scale
    if attention_mask is not None:
        logits = logits.reshape(n, h, t, s) + attention_mask[:, None, :, :]
        logits = logits.reshape(n * h, t, s)
    weights = jax.nn.softmax(logits, axis=2)
    weighted_value = jnp.einsum("bts,bse->bte", weights, value, precision=PREC)
    weighted_value = jnp.transpose(
        weighted_value.reshape(n, h, t, eh), (0, 2, 1, 3)).reshape(n, t, e)
    return jnp.matmul(weighted_value, params["wo"].T, precision=PREC)


# ----------------------------------------------------------------------------
# Tests
# ----------------------------------------------------------------------------
def _run_case(name, *, n, t, s, e, h, p, use_prior, use_mask, kv_tile=512, seed=0):
    key = jax.random.PRNGKey(seed)
    k_params, k_q, k_k, k_prior, k_mask = jax.random.split(key, 5)
    pd = p if use_prior else 0
    params = init_params(k_params, e, h, pd)

    query_source = jax.random.normal(k_q, (n, t, e), jnp.float32)
    key_source = jax.random.normal(k_k, (n, s, e), jnp.float32)
    attention_prior = (jax.random.normal(k_prior, (n, t, s, p), jnp.float32)
                       if use_prior else None)
    attention_mask = (jnp.where(jax.random.uniform(k_mask, (n, t, s)) > 0.9,
                                -1e9, 0.0).astype(jnp.float32)
                      if use_mask else None)

    out = multihead_attention(
        params, query_source, key_source,
        value_source=None,
        attention_prior=attention_prior,
        attention_mask=attention_mask,
        num_heads=h, prior_dim=pd, kv_tile=kv_tile,
    )
    out = jax.block_until_ready(out)

    ref = reference_forward(
        params, query_source, key_source, None,
        attention_prior, attention_mask, num_heads=h, prior_dim=pd,
    )
    assert out.shape == (n, t, e), f"{name}: bad output shape {out.shape}"
    max_err = float(jnp.max(jnp.abs(out - ref)))
    assert jnp.allclose(out, ref, atol=2e-2, rtol=2e-2), \
        f"{name}: mismatch vs pure-JAX reference (max abs err {max_err})"


if __name__ == "__main__":
    # Lane-dense packed path (head_dim = 128), single kv tile, prior + mask.
    _run_case("packed", n=2, t=8, s=8, e=512, h=4, p=4,
              use_prior=True, use_mask=True, seed=0)
    # Packed path with multiple kv tiles (exercises multi-step online softmax).
    _run_case("multi_kv", n=2, t=8, s=256, e=512, h=4, p=4,
              use_prior=True, use_mask=True, kv_tile=128, seed=1)
    # Head-major fallback path (head_dim = 64).
    _run_case("fallback", n=2, t=8, s=8, e=256, h=4, p=4,
              use_prior=True, use_mask=True, seed=2)
    # No prior / no mask branch.
    _run_case("plain", n=2, t=8, s=8, e=512, h=4, p=0,
              use_prior=False, use_mask=False, seed=3)

    print("KERNEL_OK")
</pallas_src>

<mosaic_0001>
module attributes {stable_mosaic.version = 11 : i64} {
  func.func @_linear_kernel(%arg0: i32, %arg1: i32, %arg2: i32, %arg3: memref<16x512xf32, #tpu.memory_space<vmem>>, %arg4: memref<528x512xf32, #tpu.memory_space<vmem>>, %arg5: memref<16x528xf32, #tpu.memory_space<vmem>>, %arg6: memref<16x528xf32, #tpu.memory_space<vmem>>) attributes {dimension_semantics = [#tpu.dimension_semantics<parallel>, #tpu.dimension_semantics<parallel>, #tpu.dimension_semantics<arbitrary>], iteration_bounds = array<i64: 1, 1, 1>, scalar_prefetch = 0 : i64, scratch_operands = 1 : i64, tpu.core_type = #tpu.core_type<tc>, window_params = [{transform_indices = @transform_0, window_bounds = array<i64: 16, 512>}, {transform_indices = @transform_1, window_bounds = array<i64: 528, 512>}, {transform_indices = @transform_2, window_bounds = array<i64: 16, 528>}]} {
    %c0_i32 = arith.constant 0 : i32
    %0 = arith.cmpi eq, %arg2, %c0_i32 : i32
    %1 = arith.extui %0 : i1 to i32
    %c0_i32_0 = arith.constant 0 : i32
    %2 = arith.cmpi ne, %1, %c0_i32_0 : i32
    scf.if %2 {
      %cst_10 = arith.constant 0.000000e+00 : f32
      %12 = vector.broadcast %cst_10 : f32 to vector<16x528xf32>
      %c0_11 = arith.constant 0 : index
      %c0_12 = arith.constant 0 : index
      %13 = vector.load %arg6[%c0_11, %c0_12] : memref<16x528xf32, #tpu.memory_space<vmem>>, vector<16x528xf32>
      tpu.vector_store %arg6[%c0_11, %c0_12], %12 {strides = array<i32>} : memref<16x528xf32, #tpu.memory_space<vmem>>, vector<16x528xf32>,
    } else {
    }
    %c0 = arith.constant 0 : index
    %c0_1 = arith.constant 0 : index
    %3 = vector.load %arg6[%c0, %c0_1] : memref<16x528xf32, #tpu.memory_space<vmem>>, vector<16x528xf32>
    %c0_2 = arith.constant 0 : index
    %c0_3 = arith.constant 0 : index
    %4 = vector.load %arg3[%c0_2, %c0_3] : memref<16x512xf32, #tpu.memory_space<vmem>>, vector<16x512xf32>
    %c0_4 = arith.constant 0 : index
    %c0_5 = arith.constant 0 : index
    %5 = vector.load %arg4[%c0_4, %c0_5] : memref<528x512xf32, #tpu.memory_space<vmem>>, vector<528x512xf32>
    %cst = arith.constant dense<0.000000e+00> : vector<16x528xf32>
    %6 = tpu.matmul %4, %5, %cst {dimension_numbers = #tpu.dot_dimension_numbers<[1], [1], [0], [0], [0, 0, 1, 0], [], []>} : vector<16x512xf32>, vector<528x512xf32>, vector<16x528xf32> -> vector<16x528xf32>
    %7 = arith.addf %3, %6 : vector<16x528xf32>
    %c0_6 = arith.constant 0 : index
    %c0_7 = arith.constant 0 : index
    %8 = vector.load %arg6[%c0_6, %c0_7] : memref<16x528xf32, #tpu.memory_space<vmem>>, vector<16x528xf32>
    tpu.vector_store %arg6[%c0_6, %c0_7], %7 {strides = array<i32>} : memref<16x528xf32, #tpu.memory_space<vmem>>, vector<16x528xf32>,
    %c0_i32_8 = arith.constant 0 : i32
    %9 = arith.cmpi eq, %arg2, %c0_i32_8 : i32
    %10 = arith.extui %9 : i1 to i32
    %c0_i32_9 = arith.constant 0 : i32
    %11 = arith.cmpi ne, %10, %c0_i32_9 : i32
    scf.if %11 {
      %c0_10 = arith.constant 0 : index
      %c0_11 = arith.constant 0 : index
      %12 = vector.load %arg6[%c0_10, %c0_11] : memref<16x528xf32, #tpu.memory_space<vmem>>, vector<16x528xf32>
      %c0_12 = arith.constant 0 : index
      %c0_13 = arith.constant 0 : index
      %13 = vector.load %arg5[%c0_12, %c0_13] : memref<16x528xf32, #tpu.memory_space<vmem>>, vector<16x528xf32>
      tpu.vector_store %arg5[%c0_12, %c0_13], %12 {strides = array<i32>} : memref<16x528xf32, #tpu.memory_space<vmem>>, vector<16x528xf32>,
    } else {
    }
    return
  }
  func.func @transform_0(%arg0: i32, %arg1: i32, %arg2: i32) -> (i32, i32) {
    %c0_i32 = arith.constant 0 : i32
    return %arg0, %arg2 : i32, i32
  }
  func.func @transform_1(%arg0: i32, %arg1: i32, %arg2: i32) -> (i32, i32) {
    %c0_i32 = arith.constant 0 : i32
    return %arg1, %arg2 : i32, i32
  }
  func.func @transform_2(%arg0: i32, %arg1: i32, %arg2: i32) -> (i32, i32) {
    %c0_i32 = arith.constant 0 : i32
    return %arg0, %arg1 : i32, i32
  }
}

</mosaic_0001>

<bundles_post_ra>
// kernel: tpu_custom_call.1
= control target key start
LH: loop header
LB: loop body
LE: loop exit
PB: predicated region body
PF: predicated region fallthrough
CT: control target
= control target key end

     0   :  { %7 = vsyncpa [#allocation4], 0  ;;  %s1299_s0 = inlined_call_operand.hbm [shape: f32[16,512], index: 0, kind: input, shape index: {}]   ;;  %s1300_s1 = inlined_call_operand.hbm [shape: f32[528,512], index: 1, kind: input, shape index: {}]   ;;  %s1301_s2 = inlined_call_operand.hbm [shape: f32[16,528], index: 2, kind: output, shape index: {}]  }
   0x1   :  { %8 = vsyncpa [#allocation7], 0 }
   0x2   :  { %9 = vsyncpa [#allocation5], 0  ;;  %s1209_s9 = smov [#allocation3]   ;;  %s1137_s13 = scalar_lea.hbm %s1299_s0, 1024 }
   0x3   :  { %s15_s10 = sshll.u32 %s1209_s9, 4  ;;  %p1138_p0 = scmp.ne.s32.totalorder %s1299_s0, %s1137_s13  ;;  %s16_s10 = int_to_ptr.vmem [resolvable:$true] %s15_s10 }
   0x4   :  { %p1141_p1 = scmp.lt.u32.totalorder %s1137_s13, %s1299_s0 }
   0x6   :  { %p1143_p2 = pnand %p1141_p1, %p1138_p0 }
   0x8   :  { %1146 = shalt.err (!%p1143_p2)
}
   0x9   :  { %s1147_s18 = scalar_lea.vmem %s16_s10, 1024  ;;  %p1152_p4 = scmp.lt.s32.totalorder %s16_s10, %s16_s10 }
   0xa   :  { %p1148_p3 = scmp.ne.s32.totalorder %s16_s10, %s1147_s18  ;;  %p1153_p5 = scmp.lt.s32.totalorder %s1147_s18, %s1147_s18 }
   0xc   :  { %p1154_p6 = por %p1153_p5, %p1152_p4 }
   0xe   :  { %p1155_p7 = pnand %p1154_p6, %p1148_p3 }
  0x10   :  { %1158 = shalt.err (!%p1155_p7)
}
  0x11   :  { %s1210_s19 = smov 512   ;;  %s1211_s20 = smov 32  }
  0x12   :  { %21 = dma.hbm_to_vmem [thread:$0]  %s1299_s0, 1024, %s16_s10, [#allocation4], %s1210_s19, %s1210_s19, %s1211_s20  }
  0x13   :  { %s1212_s23 = smov [#allocation6]   ;;  %s1159_s27 = scalar_lea.hbm %s1300_s1, 33792 }
  0x14   :  { %s27_s24 = sshll.u32 %s1212_s23, 4  ;;  %p1160_p8 = scmp.ne.s32.totalorder %s1300_s1, %s1159_s27  ;;  %s28_s24 = int_to_ptr.vmem [resolvable:$true] %s27_s24 }
  0x15   :  { %p1163_p9 = scmp.lt.u32.totalorder %s1159_s27, %s1300_s1 }
  0x17   :  { %p1165_p10 = pnand %p1163_p9, %p1160_p8 }
  0x19   :  { %1168 = shalt.err (!%p1165_p10)
}
  0x1a   :  { %s1169_s4 = scalar_lea.vmem %s28_s24, 33792  ;;  %p1174_p12 = scmp.lt.s32.totalorder %s28_s24, %s28_s24 }
  0x1b   :  { %p1170_p11 = scmp.ne.s32.totalorder %s28_s24, %s1169_s4  ;;  %p1175_p13 = scmp.lt.s32.totalorder %s1169_s4, %s1169_s4 }
  0x1d   :  { %p1176_p0 = por %p1175_p13, %p1174_p12 }
  0x1f   :  { %p1177_p1 = pnand %p1176_p0, %p1170_p11 }
  0x21   :  { %1180 = shalt.err (!%p1177_p1)
}
  0x22   :  { %33 = dma.hbm_to_vmem [thread:$0]  %s1300_s1, 33792, %s28_s24, [#allocation7], %s1210_s19, %s1210_s19, %s1211_s20  }
  0x23   :  { %1203 = dma.done.wait [#allocation4], 1024  }
  0x24   :  { %1204 = vsyncadd [#allocation4], 4294966272 }
  0x25   :  { %1205 = dma.done.wait [#allocation7], 33792  }
  0x26   :  { %1206 = vsyncadd [#allocation7], 4294933504  ;;  %v74_v0 = vld [vmem:[#allocation6 + $0x8] sm:$0xff]  ;;  %v73_v5 = vld [vmem:[#allocation6] sm:$0xff]  ;;  %vm48_vm0 = vcmask 130048   ;;  %s1214_s1 = smov [#allocation8]  }
  0x27   :  { %v78_v1 = vld [vmem:[#allocation6 + $0x28] sm:$0xff]  ;;  %v77_v6 = vld [vmem:[#allocation6 + $0x20] sm:$0xff]  ;;  %s844_s6 = sshll.u32 %s1214_s1, 4  ;;  %s845_s6 = int_to_ptr.vmem [resolvable:$true] %s844_s6 }
  0x28   :  { %v202_v2 = vld [vmem:[#allocation6 + $0x408] sm:$0xff]  ;;  %v857_v3 = vpack.c.bf16 %v78_v1, %v74_v0  ;;  %v859_v8 = vpack.c.bf16 %v77_v6, %v73_v5  ;;  %v201_v9 = vld [vmem:[#allocation6 + $0x400] sm:$0xff]  ;;  %s1181_s7 = scalar_lea.vmem %s845_s6, 1280  ;;  %p1186_p3 = scmp.lt.s32.totalorder %s845_s6, %s845_s6 }
  0x29   :  { %v206_v4 = vld [vmem:[#allocation6 + $0x428] sm:$0xff]  ;;  %v205_v10 = vld [vmem:[#allocation6 + $0x420] sm:$0xff]  ;;  %p1182_p2 = scmp.ne.s32.totalorder %s845_s6, %s1181_s7  ;;  %p1187_p4 = scmp.lt.s32.totalorder %s1181_s7, %s1181_s7 }
  0x2a   :  { %v985_v7 = vpack.c.bf16 %v206_v4, %v202_v2  ;;  %v82_v11 = vld [vmem:[#allocation6 + $0x48] sm:$0xff]  ;;  %858 = vmatprep.subr.bf16.mxu0 %v857_v3  ;;  %v987_v12 = vpack.c.bf16 %v205_v10, %v201_v9  ;;  %v81_v18 = vld [vmem:[#allocation6 + $0x40] sm:$0xff] }
  0x2b   :  { %v86_v13 = vld [vmem:[#allocation6 + $0x68] sm:$0xff]  ;;  %860 = vmatpush1.bf16.xpose.msra.mxu0 %v859_v8  ;;  %v85_v19 = vld [vmem:[#allocation6 + $0x60] sm:$0xff]  ;;  %p1188_p5 = por %p1187_p4, %p1186_p3 }
  0x2c   :  { %v210_v14 = vld [vmem:[#allocation6 + $0x448] sm:$0xff]  ;;  %986 = vmatprep.subr.bf16.mxu1 %v985_v7  ;;  %v861_v16 = vpack.c.bf16 %v86_v13, %v82_v11  ;;  %v209_v20 = vld [vmem:[#allocation6 + $0x440] sm:$0xff]  ;;  %v863_v26 = vpack.c.bf16 %v85_v19, %v81_v18 }
  0x2d   :  { %v214_v15 = vld [vmem:[#allocation6 + $0x468] sm:$0xff]  ;;  %988 = vmatpush1.bf16.xpose.msra.mxu1 %v987_v12  ;;  %v213_v21 = vld [vmem:[#allocation6 + $0x460] sm:$0xff]  ;;  %p1189_p6 = pnand %p1188_p5, %p1182_p2 }
  0x2e   :  { %v989_v17 = vpack.c.bf16 %v214_v15, %v210_v14  ;;  %862 = vmatprep.subr.bf16.mxu0 %v861_v16  ;;  %v90_v22 = vld [vmem:[#allocation6 + $0x88] sm:$0xff]  ;;  %v991_v27 = vpack.c.bf16 %v213_v21, %v209_v20  ;;  %v89_v30 = vld [vmem:[#allocation6 + $0x80] sm:$0xff] }
  0x2f   :  { %v94_v23 = vld [vmem:[#allocation6 + $0xa8] sm:$0xff]  ;;  %v93_v31 = vld [vmem:[#allocation6 + $0xa0] sm:$0xff] }
  0x30   :  { %990 = vmatprep.subr.bf16.mxu1 %v989_v17  ;;  %v218_v24 = vld [vmem:[#allocation6 + $0x488] sm:$0xff]  ;;  %v865_v28 = vpack.c.bf16 %v94_v23, %v90_v22  ;;  %v217_v32 = vld [vmem:[#allocation6 + $0x480] sm:$0xff]  ;;  %v867_v38 = vpack.c.bf16 %v93_v31, %v89_v30 }
  0x31   :  { %v222_v25 = vld [vmem:[#allocation6 + $0x4a8] sm:$0xff]  ;;  %v221_v33 = vld [vmem:[#allocation6 + $0x4a0] sm:$0xff] }
  0x32   :  { %v993_v29 = vpack.c.bf16 %v222_v25, %v218_v24  ;;  %v98_v34 = vld [vmem:[#allocation6 + $0xc8] sm:$0xff]  ;;  %v995_v39 = vpack.c.bf16 %v221_v33, %v217_v32  ;;  %v97_v42 = vld [vmem:[#allocation6 + $0xc0] sm:$0xff] }
  0x33   :  { %864 = vmatpush1.bf16.xpose.msra.mxu0 %v863_v26  ;;  %v102_v35 = vld [vmem:[#allocation6 + $0xe8] sm:$0xff]  ;;  %v101_v43 = vld [vmem:[#allocation6 + $0xe0] sm:$0xff] }
  0x34   :  { %866 = vmatprep.subr.bf16.mxu0 %v865_v28  ;;  %v226_v36 = vld [vmem:[#allocation6 + $0x4c8] sm:$0xff]  ;;  %v869_v40 = vpack.c.bf16 %v102_v35, %v98_v34  ;;  %v225_v44 = vld [vmem:[#allocation6 + $0x4c0] sm:$0xff]  ;;  %v871_v50 = vpack.c.bf16 %v101_v43, %v97_v42 }
  0x35   :  { %992 = vmatpush1.bf16.xpose.msra.mxu1 %v991_v27  ;;  %v230_v37 = vld [vmem:[#allocation6 + $0x4e8] sm:$0xff]  ;;  %v229_v45 = vld [vmem:[#allocation6 + $0x4e0] sm:$0xff] }
  0x36   :  { %994 = vmatprep.subr.bf16.mxu1 %v993_v29  ;;  %v997_v41 = vpack.c.bf16 %v230_v37, %v226_v36  ;;  %v106_v46 = vld [vmem:[#allocation6 + $0x108] sm:$0xff]  ;;  %v999_v51 = vpack.c.bf16 %v229_v45, %v225_v44  ;;  %v105_v54 = vld [vmem:[#allocation6 + $0x100] sm:$0xff] }
  0x37   :  { %v110_v47 = vld [vmem:[#allocation6 + $0x128] sm:$0xff]  ;;  %v109_v55 = vld [vmem:[#allocation6 + $0x120] sm:$0xff] }
  0x38   :  { %v234_v48 = vld [vmem:[#allocation6 + $0x508] sm:$0xff]  ;;  %v873_v52 = vpack.c.bf16 %v110_v47, %v106_v46  ;;  %v233_v56 = vld [vmem:[#allocation6 + $0x500] sm:$0xff]  ;;  %v875_v62 = vpack.c.bf16 %v109_v55, %v105_v54 }
  0x39   :  { %v238_v49 = vld [vmem:[#allocation6 + $0x528] sm:$0xff]  ;;  %v237_v57 = vld [vmem:[#allocation6 + $0x520] sm:$0xff] }
  0x3a   :  { %v1001_v53 = vpack.c.bf16 %v238_v49, %v234_v48  ;;  %v114_v58 = vld [vmem:[#allocation6 + $0x148] sm:$0xff]  ;;  %v1003_v63 = vpack.c.bf16 %v237_v57, %v233_v56  ;;  %v113_v2 = vld [vmem:[#allocation6 + $0x140] sm:$0xff] }
  0x3b   :  { %868 = vmatpush1.bf16.xpose.msra.mxu0 %v867_v38  ;;  %v118_v59 = vld [vmem:[#allocation6 + $0x168] sm:$0xff]  ;;  %v117_v3 = vld [vmem:[#allocation6 + $0x160] sm:$0xff] }
  0x3c   :  { %870 = vmatprep.subr.bf16.mxu0 %v869_v40  ;;  %v242_v60 = vld [vmem:[#allocation6 + $0x548] sm:$0xff]  ;;  %v877_v0 = vpack.c.bf16 %v118_v59, %v114_v58  ;;  %v241_v4 = vld [vmem:[#allocation6 + $0x540] sm:$0xff]  ;;  %v879_v10 = vpack.c.bf16 %v117_v3, %v113_v2 }
  0x3d   :  { %996 = vmatpush1.bf16.xpose.msra.mxu1 %v995_v39  ;;  %v246_v61 = vld [vmem:[#allocation6 + $0x568] sm:$0xff]  ;;  %v245_v5 = vld [vmem:[#allocation6 + $0x560] sm:$0xff] }
  0x3e   :  { %998 = vmatprep.subr.bf16.mxu1 %v997_v41  ;;  %v1005_v1 = vpack.c.bf16 %v246_v61, %v242_v60  ;;  %v122_v6 = vld [vmem:[#allocation6 + $0x188] sm:$0xff]  ;;  %v1007_v11 = vpack.c.bf16 %v245_v5, %v241_v4  ;;  %v121_v15 = vld [vmem:[#allocation6 + $0x180] sm:$0xff] }
  0x3f   :  { %v126_v7 = vld [vmem:[#allocation6 + $0x1a8] sm:$0xff]  ;;  %v125_v16 = vld [vmem:[#allocation6 + $0x1a0] sm:$0xff] }
  0x40   :  { %v250_v8 = vld [vmem:[#allocation6 + $0x588] sm:$0xff]  ;;  %v881_v12 = vpack.c.bf16 %v126_v7, %v122_v6  ;;  %v249_v17 = vld [vmem:[#allocation6 + $0x580] sm:$0xff]  ;;  %v883_v23 = vpack.c.bf16 %v125_v16, %v121_v15 }
  0x41   :  { %v254_v9 = vld [vmem:[#allocation6 + $0x5a8] sm:$0xff]  ;;  %v253_v18 = vld [vmem:[#allocation6 + $0x5a0] sm:$0xff] }
  0x42   :  { %v1009_v13 = vpack.c.bf16 %v254_v9, %v250_v8  ;;  %v1256_v14 = vld [vmem:[#allocation3 + $0x8] sm:$0xff]  ;;  %v1011_v24 = vpack.c.bf16 %v253_v18, %v249_v17  ;;  %v129_v27 = vld [vmem:[#allocation6 + $0x1c0] sm:$0xff] }
  0x43   :  { %872 = vmatpush1.bf16.xpose.msra.mxu0 %v871_v50  ;;  %401 = vmatprep.mubr.f32.mxu0 %v1256_v14  ;;  %v130_v19 = vld [vmem:[#allocation6 + $0x1c8] sm:$0xff]  ;;  %v133_v28 = vld [vmem:[#allocation6 + $0x1e0] sm:$0xff] }
  0x44   :  { %874 = vmatprep.subr.bf16.mxu0 %v873_v52  ;;  %555 = vmatprep.mubr.f32.mxu1 %v1256_v14  ;;  %v134_v20 = vld [vmem:[#allocation6 + $0x1e8] sm:$0xff]  ;;  %v257_v29 = vld [vmem:[#allocation6 + $0x5c0] sm:$0xff]  ;;  %v887_v35 = vpack.c.bf16 %v133_v28, %v129_v27 }
  0x45   :  { %1000 = vmatpush1.bf16.xpose.msra.mxu1 %v999_v51  ;;  %v258_v21 = vld [vmem:[#allocation6 + $0x5c8] sm:$0xff]  ;;  %v885_v25 = vpack.c.bf16 %v134_v20, %v130_v19  ;;  %v261_v30 = vld [vmem:[#allocation6 + $0x5e0] sm:$0xff] }
  0x46   :  { %1002 = vmatprep.subr.bf16.mxu1 %v1001_v53  ;;  %v262_v22 = vld [vmem:[#allocation6 + $0x5e8] sm:$0xff]  ;;  %v1015_v36 = vpack.c.bf16 %v261_v30, %v257_v29  ;;  %v137_v39 = vld [vmem:[#allocation6 + $0x200] sm:$0xff] }
  0x47   :  { %v1013_v26 = vpack.c.bf16 %v262_v22, %v258_v21  ;;  %v138_v31 = vld [vmem:[#allocation6 + $0x208] sm:$0xff]  ;;  %v141_v40 = vld [vmem:[#allocation6 + $0x220] sm:$0xff] }
  0x48   :  { %v142_v32 = vld [vmem:[#allocation6 + $0x228] sm:$0xff]  ;;  %v265_v41 = vld [vmem:[#allocation6 + $0x600] sm:$0xff]  ;;  %v891_v47 = vpack.c.bf16 %v141_v40, %v137_v39 }
  0x49   :  { %v266_v33 = vld [vmem:[#allocation6 + $0x608] sm:$0xff]  ;;  %v889_v37 = vpack.c.bf16 %v142_v32, %v138_v31  ;;  %v269_v42 = vld [vmem:[#allocation6 + $0x620] sm:$0xff] }
  0x4a   :  { %v270_v34 = vld [vmem:[#allocation6 + $0x628] sm:$0xff]  ;;  %v1019_v48 = vpack.c.bf16 %v269_v42, %v265_v41  ;;  %v145_v51 = vld [vmem:[#allocation6 + $0x240] sm:$0xff] }
  0x4b   :  { %876 = vmatpush1.bf16.xpose.msra.mxu0 %v875_v62  ;;  %v1017_v38 = vpack.c.bf16 %v270_v34, %v266_v33  ;;  %v146_v43 = vld [vmem:[#allocation6 + $0x248] sm:$0xff]  ;;  %v149_v52 = vld [vmem:[#allocation6 + $0x260] sm:$0xff] }
  0x4c   :  { %878 = vmatprep.subr.bf16.mxu0 %v877_v0  ;;  %v150_v44 = vld [vmem:[#allocation6 + $0x268] sm:$0xff]  ;;  %v273_v53 = vld [vmem:[#allocation6 + $0x640] sm:$0xff]  ;;  %v895_v59 = vpack.c.bf16 %v149_v52, %v145_v51 }
  0x4d   :  { %1004 = vmatpush1.bf16.xpose.msra.mxu1 %v1003_v63  ;;  %v274_v45 = vld [vmem:[#allocation6 + $0x648] sm:$0xff]  ;;  %v893_v49 = vpack.c.bf16 %v150_v44, %v146_v43  ;;  %v277_v54 = vld [vmem:[#allocation6 + $0x660] sm:$0xff] }
  0x4e   :  { %1006 = vmatprep.subr.bf16.mxu1 %v1005_v1  ;;  %v278_v46 = vld [vmem:[#allocation6 + $0x668] sm:$0xff]  ;;  %v1023_v60 = vpack.c.bf16 %v277_v54, %v273_v53  ;;  %v153_v63 = vld [vmem:[#allocation6 + $0x280] sm:$0xff] }
  0x4f   :  { %v1021_v50 = vpack.c.bf16 %v278_v46, %v274_v45  ;;  %v154_v55 = vld [vmem:[#allocation6 + $0x288] sm:$0xff]  ;;  %v157_v0 = vld [vmem:[#allocation6 + $0x2a0] sm:$0xff] }
  0x50   :  { %v158_v56 = vld [vmem:[#allocation6 + $0x2a8] sm:$0xff]  ;;  %v281_v1 = vld [vmem:[#allocation6 + $0x680] sm:$0xff]  ;;  %v899_v7 = vpack.c.bf16 %v157_v0, %v153_v63  ;;  %v76_v0 = vld [vmem:[#allocation6 + $0x18] sm:$0xff] }
  0x51   :  { %v282_v57 = vld [vmem:[#allocation6 + $0x688] sm:$0xff]  ;;  %v897_v61 = vpack.c.bf16 %v158_v56, %v154_v55  ;;  %v285_v2 = vld [vmem:[#allocation6 + $0x6a0] sm:$0xff] }
  0x52   :  { %v286_v58 = vld [vmem:[#allocation6 + $0x6a8] sm:$0xff]  ;;  %v1027_v8 = vpack.c.bf16 %v285_v2, %v281_v1  ;;  %v293_v15 = vld [vmem:[#allocation6 + $0x6e0] sm:$0xff]  ;;  %v80_v1 = vld [vmem:[#allocation6 + $0x38] sm:$0xff] }
  0x53   :  { %880 = vmatpush1.bf16.xpose.msra.mxu0 %v879_v10  ;;  %v1025_v62 = vpack.c.bf16 %v286_v58, %v282_v57  ;;  %v162_v3 = vld [vmem:[#allocation6 + $0x2c8] sm:$0xff]  ;;  %v301_v27 = vld [vmem:[#allocation6 + $0x720] sm:$0xff]  ;;  %v204_v2 = vld [vmem:[#allocation6 + $0x418] sm:$0xff] }
  0x54   :  { %882 = vmatprep.subr.bf16.mxu0 %v881_v12  ;;  %v166_v4 = vld [vmem:[#allocation6 + $0x2e8] sm:$0xff]  ;;  %v165_v12 = vld [vmem:[#allocation6 + $0x2e0] sm:$0xff] }
  0x55   :  { %1008 = vmatpush1.bf16.xpose.msra.mxu1 %v1007_v11  ;;  %v290_v5 = vld [vmem:[#allocation6 + $0x6c8] sm:$0xff]  ;;  %v901_v9 = vpack.c.bf16 %v166_v4, %v162_v3  ;;  %v161_v11 = vld [vmem:[#allocation6 + $0x2c0] sm:$0xff]  ;;  %v208_v3 = vld [vmem:[#allocation6 + $0x438] sm:$0xff] }
  0x56   :  { %1010 = vmatprep.subr.bf16.mxu1 %v1009_v13  ;;  %v294_v6 = vld [vmem:[#allocation6 + $0x6e8] sm:$0xff]  ;;  %v289_v13 = vld [vmem:[#allocation6 + $0x6c0] sm:$0xff]  ;;  %v903_v20 = vpack.c.bf16 %v165_v12, %v161_v11  ;;  %v207_v11 = vld [vmem:[#allocation6 + $0x430] sm:$0xff] }
  0x57   :  { %v1029_v10 = vpack.c.bf16 %v294_v6, %v290_v5  ;;  %v170_v16 = vld [vmem:[#allocation6 + $0x308] sm:$0xff]  ;;  %v1031_v21 = vpack.c.bf16 %v293_v15, %v289_v13  ;;  %v309_v39 = vld [vmem:[#allocation6 + $0x760] sm:$0xff]  ;;  %v921_v6 = vpack.c.bf16 %v80_v1, %v76_v0  ;;  %v84_v12 = vld [vmem:[#allocation6 + $0x58] sm:$0xff] }
  0x58   :  { %v174_v17 = vld [vmem:[#allocation6 + $0x328] sm:$0xff]  ;;  %v317_v51 = vld [vmem:[#allocation6 + $0x7a0] sm:$0xff]  ;;  %v88_v13 = vld [vmem:[#allocation6 + $0x78] sm:$0xff] }
  0x59   :  { %v298_v18 = vld [vmem:[#allocation6 + $0x708] sm:$0xff]  ;;  %v905_v22 = vpack.c.bf16 %v174_v17, %v170_v16  ;;  %v325_v63 = vld [vmem:[#allocation6 + $0x7e0] sm:$0xff]  ;;  %v212_v15 = vld [vmem:[#allocation6 + $0x458] sm:$0xff] }
  0x5a   :  { %v302_v19 = vld [vmem:[#allocation6 + $0x728] sm:$0xff]  ;;  %v216_v16 = vld [vmem:[#allocation6 + $0x478] sm:$0xff]  ;;  %v1260_v17 = vld [vmem:[#allocation3] sm:$0xff] }
  0x5b   :  { %884 = vmatpush1.bf16.xpose.msra.mxu0 %v883_v23  ;;  %v1033_v23 = vpack.c.bf16 %v302_v19, %v298_v18  ;;  %v178_v28 = vld [vmem:[#allocation6 + $0x348] sm:$0xff]  ;;  %v239_v0 = vld [vmem:[#allocation6 + $0x530] sm:$0xff]  ;;  %v116_v1 = vld [vmem:[#allocation6 + $0x158] sm:$0xff] }
  0x5c   :  { %886 = vmatprep.subr.bf16.mxu0 %v885_v25  ;;  %v173_v25 = vld [vmem:[#allocation6 + $0x320] sm:$0xff]  ;;  %v182_v29 = vld [vmem:[#allocation6 + $0x368] sm:$0xff] }
  0x5d   :  { %1012 = vmatpush1.bf16.xpose.msra.mxu1 %v1011_v24  ;;  %v169_v24 = vld [vmem:[#allocation6 + $0x300] sm:$0xff]  ;;  %v306_v30 = vld [vmem:[#allocation6 + $0x748] sm:$0xff]  ;;  %v909_v34 = vpack.c.bf16 %v182_v29, %v178_v28  ;;  %v215_v28 = vld [vmem:[#allocation6 + $0x470] sm:$0xff] }
  0x5e   :  { %1014 = vmatprep.subr.bf16.mxu1 %v1013_v26  ;;  %v297_v26 = vld [vmem:[#allocation6 + $0x700] sm:$0xff]  ;;  %v310_v31 = vld [vmem:[#allocation6 + $0x768] sm:$0xff]  ;;  %v907_v32 = vpack.c.bf16 %v173_v25, %v169_v24  ;;  %v87_v25 = vld [vmem:[#allocation6 + $0x70] sm:$0xff] }
  0x5f   :  { %v1035_v33 = vpack.c.bf16 %v301_v27, %v297_v26  ;;  %v186_v40 = vld [vmem:[#allocation6 + $0x388] sm:$0xff]  ;;  %v1266_v24 = vld [vmem:[#allocation3 + $0x20] sm:$0xff]  ;;  %v211_v26 = vld [vmem:[#allocation6 + $0x450] sm:$0xff] }
  0x60   :  { %v190_v41 = vld [vmem:[#allocation6 + $0x3a8] sm:$0xff]  ;;  %v1268_v27 = vld [vmem:[#allocation3 + $0x18] sm:$0xff] }
  0x61   :  { %v314_v42 = vld [vmem:[#allocation6 + $0x788] sm:$0xff]  ;;  %v913_v46 = vpack.c.bf16 %v190_v41, %v186_v40  ;;  %v92_v29 = vld [vmem:[#allocation6 + $0x98] sm:$0xff]  ;;  %v223_v40 = vld [vmem:[#allocation6 + $0x4b0] sm:$0xff] }
  0x62   :  { %v318_v43 = vld [vmem:[#allocation6 + $0x7a8] sm:$0xff]  ;;  %v100_v41 = vld [vmem:[#allocation6 + $0xd8] sm:$0xff] }
  0x63   :  { %888 = vmatpush1.bf16.xpose.msra.mxu0 %v887_v35  ;;  %v1037_v35 = vpack.c.bf16 %v310_v31, %v306_v30  ;;  %v194_v52 = vld [vmem:[#allocation6 + $0x3c8] sm:$0xff]  ;;  %v96_v30 = vld [vmem:[#allocation6 + $0xb8] sm:$0xff] }
  0x64   :  { %890 = vmatprep.subr.bf16.mxu0 %v889_v37  ;;  %v181_v37 = vld [vmem:[#allocation6 + $0x360] sm:$0xff]  ;;  %v198_v53 = vld [vmem:[#allocation6 + $0x3e8] sm:$0xff]  ;;  %v220_v31 = vld [vmem:[#allocation6 + $0x498] sm:$0xff] }
  0x65   :  { %1016 = vmatpush1.bf16.xpose.msra.mxu1 %v1015_v36  ;;  %v177_v36 = vld [vmem:[#allocation6 + $0x340] sm:$0xff]  ;;  %v322_v54 = vld [vmem:[#allocation6 + $0x7c8] sm:$0xff]  ;;  %v917_v58 = vpack.c.bf16 %v198_v53, %v194_v52  ;;  %v231_v52 = vld [vmem:[#allocation6 + $0x4f0] sm:$0xff] }
  0x66   :  { %1018 = vmatprep.subr.bf16.mxu1 %v1017_v38  ;;  %v305_v38 = vld [vmem:[#allocation6 + $0x740] sm:$0xff]  ;;  %v911_v44 = vpack.c.bf16 %v181_v37, %v177_v36  ;;  %v326_v55 = vld [vmem:[#allocation6 + $0x7e8] sm:$0xff]  ;;  %v91_v37 = vld [vmem:[#allocation6 + $0x90] sm:$0xff] }
  0x67   :  { %v1039_v45 = vpack.c.bf16 %v309_v39, %v305_v38  ;;  %v95_v38 = vld [vmem:[#allocation6 + $0xb0] sm:$0xff]  ;;  %v108_v53 = vld [vmem:[#allocation6 + $0x118] sm:$0xff] }
  0x68   :  { %v219_v39 = vld [vmem:[#allocation6 + $0x490] sm:$0xff] }
  0x6b   :  { %892 = vmatpush1.bf16.xpose.msra.mxu0 %v891_v47  ;;  %v1041_v47 = vpack.c.bf16 %v318_v43, %v314_v42  ;;  %v104_v42 = vld [vmem:[#allocation6 + $0xf8] sm:$0xff] }
  0x6c   :  { %894 = vmatprep.subr.bf16.mxu0 %v893_v49  ;;  %v189_v49 = vld [vmem:[#allocation6 + $0x3a0] sm:$0xff]  ;;  %v228_v43 = vld [vmem:[#allocation6 + $0x4d8] sm:$0xff] }
  0x6d   :  { %1020 = vmatpush1.bf16.xpose.msra.mxu1 %v1019_v48  ;;  %v185_v48 = vld [vmem:[#allocation6 + $0x380] sm:$0xff] }
  0x6e   :  { %1022 = vmatprep.subr.bf16.mxu1 %v1021_v50  ;;  %v313_v50 = vld [vmem:[#allocation6 + $0x780] sm:$0xff]  ;;  %v915_v56 = vpack.c.bf16 %v189_v49, %v185_v48  ;;  %v99_v49 = vld [vmem:[#allocation6 + $0xd0] sm:$0xff] }
  0x6f   :  { %v1043_v57 = vpack.c.bf16 %v317_v51, %v313_v50  ;;  %v103_v50 = vld [vmem:[#allocation6 + $0xf0] sm:$0xff] }
  0x70   :  { %v227_v51 = vld [vmem:[#allocation6 + $0x4d0] sm:$0xff] }
  0x73   :  { %896 = vmatpush1.bf16.xpose.msra.mxu0 %v895_v59  ;;  %v1045_v59 = vpack.c.bf16 %v326_v55, %v322_v54  ;;  %v112_v54 = vld [vmem:[#allocation6 + $0x138] sm:$0xff] }
  0x74   :  { %898 = vmatprep.subr.bf16.mxu0 %v897_v61  ;;  %v197_v61 = vld [vmem:[#allocation6 + $0x3e0] sm:$0xff]  ;;  %v236_v55 = vld [vmem:[#allocation6 + $0x518] sm:$0xff] }
  0x75   :  { %1024 = vmatpush1.bf16.xpose.msra.mxu1 %v1023_v60  ;;  %v193_v60 = vld [vmem:[#allocation6 + $0x3c0] sm:$0xff] }
  0x76   :  { %1026 = vmatprep.subr.bf16.mxu1 %v1025_v62  ;;  %v321_v62 = vld [vmem:[#allocation6 + $0x7c0] sm:$0xff]  ;;  %v919_v4 = vpack.c.bf16 %v197_v61, %v193_v60  ;;  %v107_v61 = vld [vmem:[#allocation6 + $0x110] sm:$0xff] }
  0x77   :  { %v1047_v5 = vpack.c.bf16 %v325_v63, %v321_v62  ;;  %v111_v62 = vld [vmem:[#allocation6 + $0x130] sm:$0xff] }
  0x78   :  { %v235_v63 = vld [vmem:[#allocation6 + $0x510] sm:$0xff] }
  0x7b   :  { %900 = vmatpush1.bf16.xpose.msra.mxu0 %v899_v7  ;;  %v1049_v7 = vpack.c.bf16 %v208_v3, %v204_v2  ;;  %v120_v2 = vld [vmem:[#allocation6 + $0x178] sm:$0xff] }
  0x7c   :  { %902 = vmatprep.subr.bf16.mxu0 %v901_v9  ;;  %v79_v9 = vld [vmem:[#allocation6 + $0x30] sm:$0xff]  ;;  %v244_v3 = vld [vmem:[#allocation6 + $0x558] sm:$0xff] }
  0x7d   :  { %1028 = vmatpush1.bf16.xpose.msra.mxu1 %v1027_v8  ;;  %v75_v8 = vld [vmem:[#allocation6 + $0x10] sm:$0xff] }
  0x7e   :  { %1030 = vmatprep.subr.bf16.mxu1 %v1029_v10  ;;  %v203_v10 = vld [vmem:[#allocation6 + $0x410] sm:$0xff]  ;;  %v923_v18 = vpack.c.bf16 %v79_v9, %v75_v8 }
  0x7f   :  { %v1051_v19 = vpack.c.bf16 %v207_v11, %v203_v10  ;;  %v115_v9 = vld [vmem:[#allocation6 + $0x150] sm:$0xff] }
  0x80   :  { %v119_v10 = vld [vmem:[#allocation6 + $0x170] sm:$0xff] }
  0x81   :  { %v243_v11 = vld [vmem:[#allocation6 + $0x550] sm:$0xff] }
  0x83   :  { %904 = vmatpush1.bf16.xpose.msra.mxu0 %v903_v20  ;;  %v925_v20 = vpack.c.bf16 %v88_v13, %v84_v12  ;;  %v247_v12 = vld [vmem:[#allocation6 + $0x570] sm:$0xff]  ;;  %v124_v13 = vld [vmem:[#allocation6 + $0x198] sm:$0xff] }
  0x84   :  { %906 = vmatprep.subr.bf16.mxu0 %v905_v22  ;;  %v1263_v22 = vld [vmem:[#allocation3 + $0x28] sm:$0xff] }
  0x85   :  { %1032 = vmatpush1.bf16.xpose.msra.mxu1 %v1031_v21  ;;  %v1053_v21 = vpack.c.bf16 %v216_v16, %v212_v15  ;;  %v128_v15 = vld [vmem:[#allocation6 + $0x1b8] sm:$0xff] }
  0x86   :  { %1034 = vmatprep.subr.bf16.mxu1 %v1033_v23  ;;  %v83_v23 = vld [vmem:[#allocation6 + $0x50] sm:$0xff]  ;;  %v252_v16 = vld [vmem:[#allocation6 + $0x598] sm:$0xff] }
  0x8b   :  { %908 = vmatpush1.bf16.xpose.msra.mxu0 %v907_v32  ;;  %v224_v32 = vld [vmem:[#allocation6 + $0x4b8] sm:$0xff] }
  0x8c   :  { %910 = vmatprep.subr.bf16.mxu0 %v909_v34  ;;  %v1055_v34 = vpack.c.bf16 %v215_v28, %v211_v26  ;;  %v1057_v36 = vpack.c.bf16 %v224_v32, %v220_v31  ;;  %v127_v26 = vld [vmem:[#allocation6 + $0x1b0] sm:$0xff]  ;;  %v136_v31 = vld [vmem:[#allocation6 + $0x1f8] sm:$0xff] }
  0x8d   :  { %1036 = vmatpush1.bf16.xpose.msra.mxu1 %v1035_v33  ;;  %v927_v33 = vpack.c.bf16 %v87_v25, %v83_v23  ;;  %v123_v25 = vld [vmem:[#allocation6 + $0x190] sm:$0xff]  ;;  %v260_v32 = vld [vmem:[#allocation6 + $0x5d8] sm:$0xff] }
  0x8e   :  { %1038 = vmatprep.subr.bf16.mxu1 %v1037_v35  ;;  %v929_v35 = vpack.c.bf16 %v96_v30, %v92_v29  ;;  %v251_v28 = vld [vmem:[#allocation6 + $0x590] sm:$0xff]  ;;  %v132_v30 = vld [vmem:[#allocation6 + $0x1d8] sm:$0xff] }
  0x8f   :  { %v255_v29 = vld [vmem:[#allocation6 + $0x5b0] sm:$0xff] }
  0x93   :  { %912 = vmatpush1.bf16.xpose.msra.mxu0 %v911_v44  ;;  %v232_v44 = vld [vmem:[#allocation6 + $0x4f8] sm:$0xff] }
  0x94   :  { %914 = vmatprep.subr.bf16.mxu0 %v913_v46  ;;  %v1059_v46 = vpack.c.bf16 %v223_v40, %v219_v39  ;;  %v1061_v48 = vpack.c.bf16 %v232_v44, %v228_v43  ;;  %v135_v39 = vld [vmem:[#allocation6 + $0x1f0] sm:$0xff]  ;;  %v144_v43 = vld [vmem:[#allocation6 + $0x238] sm:$0xff] }
  0x95   :  { %1040 = vmatpush1.bf16.xpose.msra.mxu1 %v1039_v45  ;;  %v931_v45 = vpack.c.bf16 %v95_v38, %v91_v37  ;;  %v131_v38 = vld [vmem:[#allocation6 + $0x1d0] sm:$0xff]  ;;  %v268_v44 = vld [vmem:[#allocation6 + $0x618] sm:$0xff] }
  0x96   :  { %1042 = vmatprep.subr.bf16.mxu1 %v1041_v47  ;;  %v933_v47 = vpack.c.bf16 %v104_v42, %v100_v41  ;;  %v259_v40 = vld [vmem:[#allocation6 + $0x5d0] sm:$0xff]  ;;  %v140_v42 = vld [vmem:[#allocation6 + $0x218] sm:$0xff] }
  0x97   :  { %v263_v41 = vld [vmem:[#allocation6 + $0x5f0] sm:$0xff] }
  0x9b   :  { %916 = vmatpush1.bf16.xpose.msra.mxu0 %v915_v56  ;;  %v240_v56 = vld [vmem:[#allocation6 + $0x538] sm:$0xff] }
  0x9c   :  { %918 = vmatprep.subr.bf16.mxu0 %v917_v58  ;;  %v1063_v58 = vpack.c.bf16 %v231_v52, %v227_v51  ;;  %v1065_v60 = vpack.c.bf16 %v240_v56, %v236_v55  ;;  %v143_v51 = vld [vmem:[#allocation6 + $0x230] sm:$0xff]  ;;  %v152_v55 = vld [vmem:[#allocation6 + $0x278] sm:$0xff] }
  0x9d   :  { %1044 = vmatpush1.bf16.xpose.msra.mxu1 %v1043_v57  ;;  %v935_v57 = vpack.c.bf16 %v103_v50, %v99_v49  ;;  %v139_v50 = vld [vmem:[#allocation6 + $0x210] sm:$0xff]  ;;  %v276_v56 = vld [vmem:[#allocation6 + $0x658] sm:$0xff] }
  0x9e   :  { %1046 = vmatprep.subr.bf16.mxu1 %v1045_v59  ;;  %v937_v59 = vpack.c.bf16 %v112_v54, %v108_v53  ;;  %v267_v52 = vld [vmem:[#allocation6 + $0x610] sm:$0xff]  ;;  %v148_v54 = vld [vmem:[#allocation6 + $0x258] sm:$0xff] }
  0x9f   :  { %v271_v53 = vld [vmem:[#allocation6 + $0x630] sm:$0xff] }
  0xa3   :  { %920 = vmatpush1.bf16.xpose.msra.mxu0 %v919_v4  ;;  %v248_v4 = vld [vmem:[#allocation6 + $0x578] sm:$0xff] }
  0xa4   :  { %922 = vmatprep.subr.bf16.mxu0 %v921_v6  ;;  %v1067_v6 = vpack.c.bf16 %v239_v0, %v235_v63  ;;  %v1069_v8 = vpack.c.bf16 %v248_v4, %v244_v3  ;;  %v151_v63 = vld [vmem:[#allocation6 + $0x270] sm:$0xff]  ;;  %v160_v3 = vld [vmem:[#allocation6 + $0x2b8] sm:$0xff] }
  0xa5   :  { %1048 = vmatpush1.bf16.xpose.msra.mxu1 %v1047_v5  ;;  %v939_v5 = vpack.c.bf16 %v111_v62, %v107_v61  ;;  %v147_v62 = vld [vmem:[#allocation6 + $0x250] sm:$0xff]  ;;  %v284_v4 = vld [vmem:[#allocation6 + $0x698] sm:$0xff] }
  0xa6   :  { %1050 = vmatprep.subr.bf16.mxu1 %v1049_v7  ;;  %v941_v7 = vpack.c.bf16 %v120_v2, %v116_v1  ;;  %v275_v0 = vld [vmem:[#allocation6 + $0x650] sm:$0xff]  ;;  %v156_v2 = vld [vmem:[#allocation6 + $0x298] sm:$0xff] }
  0xa7   :  { %v279_v1 = vld [vmem:[#allocation6 + $0x670] sm:$0xff] }
  0xaa   :  { %402 = vmatmul.mubr.f32.vlgmr.msra.gmra.mrb[0].mxu0 %v1260_v17 }
  0xab   :  { %924 = vmatpush1.bf16.xpose.msra.mxu0 %v923_v18  ;;  %407 = vmatprep.mubr.f32.mxu0 %v1263_v22  ;;  %v256_v18 = vld [vmem:[#allocation6 + $0x5b8] sm:$0xff] }
  0xac   :  { %556 = vmatmul.mubr.f32.vlgmr.msra.gmra.mrb[0].mxu1 %v1260_v17  ;;  %926 = vmatprep.subr.bf16.mxu0 %v925_v20  ;;  %v1071_v20 = vpack.c.bf16 %v247_v12, %v243_v11  ;;  %v1073_v23 = vpack.c.bf16 %v256_v18, %v252_v16  ;;  %v159_v11 = vld [vmem:[#allocation6 + $0x2b0] sm:$0xff]  ;;  %v168_v16 = vld [vmem:[#allocation6 + $0x2f8] sm:$0xff] }
  0xad   :  { %1052 = vmatpush1.bf16.xpose.msra.mxu1 %v1051_v19  ;;  %561 = vmatprep.mubr.f32.mxu1 %v1263_v22  ;;  %v943_v19 = vpack.c.bf16 %v119_v10, %v115_v9  ;;  %v155_v10 = vld [vmem:[#allocation6 + $0x290] sm:$0xff]  ;;  %v292_v18 = vld [vmem:[#allocation6 + $0x6d8] sm:$0xff] }
  0xae   :  { %1054 = vmatprep.subr.bf16.mxu1 %v1053_v21  ;;  %408 = vmatmul.mubr.f32.gmra.mrb[2].mxu0 %v1266_v24  ;;  %v945_v21 = vpack.c.bf16 %v128_v15, %v124_v13  ;;  %v283_v12 = vld [vmem:[#allocation6 + $0x690] sm:$0xff]  ;;  %v164_v15 = vld [vmem:[#allocation6 + $0x2d8] sm:$0xff] }
  0xaf   :  { %478 = vmatprep.mubr.f32.mxu0 %v1268_v27  ;;  %v287_v13 = vld [vmem:[#allocation6 + $0x6b0] sm:$0xff] }
  0xb0   :  { %562 = vmatmul.mubr.f32.gmra.mrb[2].mxu1 %v1266_v24 }
  0xb1   :  { %632 = vmatprep.mubr.f32.mxu1 %v1268_v27 }
  0xb3   :  { %928 = vmatpush1.bf16.xpose.msra.mxu0 %v927_v33  ;;  %v264_v33 = vld [vmem:[#allocation6 + $0x5f8] sm:$0xff] }
  0xb4   :  { %930 = vmatprep.subr.bf16.mxu0 %v929_v35  ;;  %v1075_v35 = vpack.c.bf16 %v255_v29, %v251_v28  ;;  %v1077_v37 = vpack.c.bf16 %v264_v33, %v260_v32  ;;  %v167_v28 = vld [vmem:[#allocation6 + $0x2f0] sm:$0xff]  ;;  %v176_v32 = vld [vmem:[#allocation6 + $0x338] sm:$0xff] }
  0xb5   :  { %1056 = vmatpush1.bf16.xpose.msra.mxu1 %v1055_v34  ;;  %v947_v34 = vpack.c.bf16 %v127_v26, %v123_v25  ;;  %v163_v26 = vld [vmem:[#allocation6 + $0x2d0] sm:$0xff]  ;;  %v300_v33 = vld [vmem:[#allocation6 + $0x718] sm:$0xff] }
  0xb6   :  { %1058 = vmatprep.subr.bf16.mxu1 %v1057_v36  ;;  %v949_v36 = vpack.c.bf16 %v136_v31, %v132_v30  ;;  %v291_v29 = vld [vmem:[#allocation6 + $0x6d0] sm:$0xff]  ;;  %v172_v31 = vld [vmem:[#allocation6 + $0x318] sm:$0xff] }
  0xb7   :  { %v295_v30 = vld [vmem:[#allocation6 + $0x6f0] sm:$0xff] }
  0xbb   :  { %932 = vmatpush1.bf16.xpose.msra.mxu0 %v931_v45  ;;  %v272_v45 = vld [vmem:[#allocation6 + $0x638] sm:$0xff] }
  0xbc   :  { %934 = vmatprep.subr.bf16.mxu0 %v933_v47  ;;  %v1079_v47 = vpack.c.bf16 %v263_v41, %v259_v40  ;;  %v1081_v49 = vpack.c.bf16 %v272_v45, %v268_v44  ;;  %v175_v40 = vld [vmem:[#allocation6 + $0x330] sm:$0xff]  ;;  %v184_v44 = vld [vmem:[#allocation6 + $0x378] sm:$0xff] }
  0xbd   :  { %1060 = vmatpush1.bf16.xpose.msra.mxu1 %v1059_v46  ;;  %v951_v46 = vpack.c.bf16 %v135_v39, %v131_v38  ;;  %v171_v39 = vld [vmem:[#allocation6 + $0x310] sm:$0xff]  ;;  %v308_v45 = vld [vmem:[#allocation6 + $0x758] sm:$0xff] }
  0xbe   :  { %1062 = vmatprep.subr.bf16.mxu1 %v1061_v48  ;;  %v953_v48 = vpack.c.bf16 %v144_v43, %v140_v42  ;;  %v299_v41 = vld [vmem:[#allocation6 + $0x710] sm:$0xff]  ;;  %v180_v43 = vld [vmem:[#allocation6 + $0x358] sm:$0xff] }
  0xbf   :  { %v303_v42 = vld [vmem:[#allocation6 + $0x730] sm:$0xff] }
  0xc3   :  { %936 = vmatpush1.bf16.xpose.msra.mxu0 %v935_v57  ;;  %v280_v57 = vld [vmem:[#allocation6 + $0x678] sm:$0xff] }
  0xc4   :  { %938 = vmatprep.subr.bf16.mxu0 %v937_v59  ;;  %v1083_v59 = vpack.c.bf16 %v271_v53, %v267_v52  ;;  %v1085_v61 = vpack.c.bf16 %v280_v57, %v276_v56  ;;  %v183_v52 = vld [vmem:[#allocation6 + $0x370] sm:$0xff]  ;;  %v192_v56 = vld [vmem:[#allocation6 + $0x3b8] sm:$0xff] }
  0xc5   :  { %1064 = vmatpush1.bf16.xpose.msra.mxu1 %v1063_v58  ;;  %v955_v58 = vpack.c.bf16 %v143_v51, %v139_v50  ;;  %v179_v51 = vld [vmem:[#allocation6 + $0x350] sm:$0xff]  ;;  %v316_v57 = vld [vmem:[#allocation6 + $0x798] sm:$0xff] }
  0xc6   :  { %1066 = vmatprep.subr.bf16.mxu1 %v1065_v60  ;;  %v957_v60 = vpack.c.bf16 %v152_v55, %v148_v54  ;;  %v307_v53 = vld [vmem:[#allocation6 + $0x750] sm:$0xff]  ;;  %v188_v55 = vld [vmem:[#allocation6 + $0x398] sm:$0xff] }
  0xc7   :  { %v311_v54 = vld [vmem:[#allocation6 + $0x770] sm:$0xff] }
  0xcb   :  { %940 = vmatpush1.bf16.xpose.msra.mxu0 %v939_v5  ;;  %v288_v5 = vld [vmem:[#allocation6 + $0x6b8] sm:$0xff] }
  0xcc   :  { %942 = vmatprep.subr.bf16.mxu0 %v941_v7  ;;  %v1087_v7 = vpack.c.bf16 %v279_v1, %v275_v0  ;;  %v1089_v9 = vpack.c.bf16 %v288_v5, %v284_v4  ;;  %v191_v0 = vld [vmem:[#allocation6 + $0x3b0] sm:$0xff]  ;;  %v200_v4 = vld [vmem:[#allocation6 + $0x3f8] sm:$0xff] }
  0xcd   :  { %1068 = vmatpush1.bf16.xpose.msra.mxu1 %v1067_v6  ;;  %v959_v6 = vpack.c.bf16 %v151_v63, %v147_v62  ;;  %v187_v63 = vld [vmem:[#allocation6 + $0x390] sm:$0xff]  ;;  %v324_v5 = vld [vmem:[#allocation6 + $0x7d8] sm:$0xff] }
  0xce   :  { %1070 = vmatprep.subr.bf16.mxu1 %v1069_v8  ;;  %v961_v8 = vpack.c.bf16 %v160_v3, %v156_v2  ;;  %v315_v1 = vld [vmem:[#allocation6 + $0x790] sm:$0xff]  ;;  %v196_v3 = vld [vmem:[#allocation6 + $0x3d8] sm:$0xff] }
  0xcf   :  { %v319_v2 = vld [vmem:[#allocation6 + $0x7b0] sm:$0xff] }
  0xd3   :  { %944 = vmatpush1.bf16.xpose.msra.mxu0 %v943_v19  ;;  %v296_v19 = vld [vmem:[#allocation6 + $0x6f8] sm:$0xff] }
  0xd4   :  { %946 = vmatprep.subr.bf16.mxu0 %v945_v21  ;;  %v1091_v21 = vpack.c.bf16 %v287_v13, %v283_v12  ;;  %v1093_v25 = vpack.c.bf16 %v296_v19, %v292_v18  ;;  %v199_v12 = vld [vmem:[#allocation6 + $0x3f0] sm:$0xff]  ;;  %v334_v18 = vld [vmem:[#allocation6 + $0x828] sm:$0xff]  ;;  %v332_v19 = vld [vmem:[#allocation6 + $0x818] sm:$0xff] }
  0xd5   :  { %1072 = vmatpush1.bf16.xpose.msra.mxu1 %v1071_v20  ;;  %v963_v20 = vpack.c.bf16 %v159_v11, %v155_v10  ;;  %v195_v11 = vld [vmem:[#allocation6 + $0x3d0] sm:$0xff] }
  0xd6   :  { %1074 = vmatprep.subr.bf16.mxu1 %v1073_v23  ;;  %v965_v23 = vpack.c.bf16 %v168_v16, %v164_v15  ;;  %v323_v13 = vld [vmem:[#allocation6 + $0x7d0] sm:$0xff]  ;;  %v330_v16 = vld [vmem:[#allocation6 + $0x808] sm:$0xff] }
  0xd7   :  { %v327_v15 = vld [vmem:[#allocation6 + $0x7f0] sm:$0xff] }
  0xdb   :  { %948 = vmatpush1.bf16.xpose.msra.mxu0 %v947_v34  ;;  %v304_v34 = vld [vmem:[#allocation6 + $0x738] sm:$0xff] }
  0xdc   :  { %950 = vmatprep.subr.bf16.mxu0 %v949_v36  ;;  %v1095_v36 = vpack.c.bf16 %v295_v30, %v291_v29  ;;  %v1097_v38 = vpack.c.bf16 %v304_v34, %v300_v33  ;;  %v333_v29 = vld [vmem:[#allocation6 + $0x820] sm:$0xff]  ;;  %v331_v30 = vld [vmem:[#allocation6 + $0x810] sm:$0xff] }
  0xdd   :  { %1076 = vmatpush1.bf16.xpose.msra.mxu1 %v1075_v35  ;;  %v967_v35 = vpack.c.bf16 %v167_v28, %v163_v26  ;;  %v329_v28 = vld [vmem:[#allocation6 + $0x800] sm:$0xff] }
  0xde   :  { %1078 = vmatprep.subr.bf16.mxu1 %v1077_v37  ;;  %v969_v37 = vpack.c.bf16 %v176_v32, %v172_v31  ;;  %v335_v31 = vld [vmem:[#allocation6 + $0x830] sm:$0xff]  ;;  %v1115_v33 = vpack.c.bf16 %v333_v29, %v329_v28 }
  0xdf   :  { %v67_v32 = vld [vmem:[#allocation3 + $0x10] sm:$0xff]  ;;  %v1119_v34 = vpack.c.bf16 %v335_v31, %v331_v30 }
  0xe3   :  { %952 = vmatpush1.bf16.xpose.msra.mxu0 %v951_v46  ;;  %v312_v46 = vld [vmem:[#allocation6 + $0x778] sm:$0xff] }
  0xe4   :  { %954 = vmatprep.subr.bf16.mxu0 %v953_v48  ;;  %v1099_v48 = vpack.c.bf16 %v303_v42, %v299_v41  ;;  %v1101_v50 = vpack.c.bf16 %v312_v46, %v308_v45 }
  0xe5   :  { %1080 = vmatpush1.bf16.xpose.msra.mxu1 %v1079_v47  ;;  %v971_v47 = vpack.c.bf16 %v175_v40, %v171_v39 }
  0xe6   :  { %1082 = vmatprep.subr.bf16.mxu1 %v1081_v49  ;;  %v973_v49 = vpack.c.bf16 %v184_v44, %v180_v43 }
  0xeb   :  { %956 = vmatpush1.bf16.xpose.msra.mxu0 %v955_v58  ;;  %v320_v58 = vld [vmem:[#allocation6 + $0x7b8] sm:$0xff] }
  0xec   :  { %958 = vmatprep.subr.bf16.mxu0 %v957_v60  ;;  %v1103_v60 = vpack.c.bf16 %v311_v54, %v307_v53  ;;  %v1105_v62 = vpack.c.bf16 %v320_v58, %v316_v57 }
  0xed   :  { %1084 = vmatpush1.bf16.xpose.msra.mxu1 %v1083_v59  ;;  %v975_v59 = vpack.c.bf16 %v183_v52, %v179_v51 }
  0xee   :  { %1086 = vmatprep.subr.bf16.mxu1 %v1085_v61  ;;  %v977_v61 = vpack.c.bf16 %v192_v56, %v188_v55 }
  0xf3   :  { %960 = vmatpush1.bf16.xpose.msra.mxu0 %v959_v6  ;;  %v328_v6 = vld [vmem:[#allocation6 + $0x7f8] sm:$0xff] }
  0xf4   :  { %962 = vmatprep.subr.bf16.mxu0 %v961_v8  ;;  %v1107_v8 = vpack.c.bf16 %v319_v2, %v315_v1  ;;  %v1109_v10 = vpack.c.bf16 %v328_v6, %v324_v5 }
  0xf5   :  { %1088 = vmatpush1.bf16.xpose.msra.mxu1 %v1087_v7  ;;  %v979_v7 = vpack.c.bf16 %v191_v0, %v187_v63 }
  0xf6   :  { %1090 = vmatprep.subr.bf16.mxu1 %v1089_v9  ;;  %v981_v9 = vpack.c.bf16 %v200_v4, %v196_v3 }
  0xfb   :  { %964 = vmatpush1.bf16.xpose.msra.mxu0 %v963_v20  ;;  %v336_v20 = vld [vmem:[#allocation6 + $0x838] sm:$0xff] }
  0xfc   :  { %966 = vmatprep.subr.bf16.mxu0 %v965_v23  ;;  %v1111_v23 = vpack.c.bf16 %v327_v15, %v323_v13  ;;  %v1117_v26 = vpack.c.bf16 %v336_v20, %v332_v19 }
  0xfd   :  { %1092 = vmatpush1.bf16.xpose.msra.mxu1 %v1091_v21  ;;  %v983_v21 = vpack.c.bf16 %v199_v12, %v195_v11 }
  0xfe   :  { %1094 = vmatprep.subr.bf16.mxu1 %v1093_v25  ;;  %v1113_v25 = vpack.c.bf16 %v334_v18, %v330_v16 }
 0x103   :  { %968 = vmatpush1.bf16.xpose.msra.mxu0 %v967_v35  ;;  %v72_v35 = vld [vmem:[#allocation3 + $0x38] sm:$0xff] }
 0x104   :  { %970 = vmatprep.subr.bf16.mxu0 %v969_v37  ;;  %v1213_v37 = vmov 0.0  }
 0x105   :  { %1096 = vmatpush1.bf16.xpose.msra.mxu1 %v1095_v36  ;;  %v71_v36 = vld [vmem:[#allocation3 + $0x30] sm:$0xff]  ;;  %49 = vst.msk [vmem:[#allocation2 + $0x20] sm:$0xff] %vm48_vm0, %v1213_v37  ;;  %54 = vst.msk [vmem:[#allocation2 + $0x48] sm:$0xff] %vm48_vm0, %v1213_v37 }
 0x106   :  { %1098 = vmatprep.subr.bf16.mxu1 %v1097_v38 }
 0x10b   :  { %972 = vmatpush1.bf16.xpose.msra.mxu0 %v971_v47 }
 0x10c   :  { %974 = vmatprep.subr.bf16.mxu0 %v973_v49  ;;  %v59_v42 = vld [vmem:[#allocation2 + $0x20] sm:$0xff]  ;;  %v64_v49 = vld [vmem:[#allocation2 + $0x48] sm:$0xff] }
 0x10d   :  { %1100 = vmatpush1.bf16.xpose.msra.mxu1 %v1099_v48 }
 0x10e   :  { %1102 = vmatprep.subr.bf16.mxu1 %v1101_v50 }
 0x113   :  { %976 = vmatpush1.bf16.xpose.msra.mxu0 %v975_v59 }
 0x114   :  { %978 = vmatprep.subr.bf16.mxu0 %v977_v61 }
 0x115   :  { %1104 = vmatpush1.bf16.xpose.msra.mxu1 %v1103_v60 }
 0x116   :  { %1106 = vmatprep.subr.bf16.mxu1 %v1105_v62 }
 0x11b   :  { %980 = vmatpush1.bf16.xpose.msra.mxu0 %v979_v7 }
 0x11c   :  { %982 = vmatprep.subr.bf16.mxu0 %v981_v9 }
 0x11d   :  { %1108 = vmatpush1.bf16.xpose.msra.mxu1 %v1107_v8 }
 0x11e   :  { %1110 = vmatprep.subr.bf16.mxu1 %v1109_v10 }
 0x123   :  { %984 = vmatpush1.bf16.xpose.msra.mxu0 %v983_v21 }
 0x124   :  { %1114 = vmatprep.subr.bf16.mxu0 %v1113_v25 }
 0x125   :  { %1112 = vmatpush1.bf16.xpose.msra.mxu1 %v1111_v23 }
 0x126   :  { %1118 = vmatprep.subr.bf16.mxu1 %v1117_v26 }
 0x12a   :  { %479 = vmatmul.mubr.f32.vlgmr.msra.gmra.mrb[0].mxu0 %v67_v32 }
 0x12b   :  { %1116 = vmatpush1.bf16.xpose.msra.mxu0 %v1115_v33  ;;  %484 = vmatprep.mubr.f32.mxu0 %v72_v35 }
 0x12c   :  { %633 = vmatmul.mubr.f32.vlgmr.msra.gmra.mrb[0].mxu1 %v67_v32 }
 0x12d   :  { %1120 = vmatpush1.bf16.xpose.msra.mxu1 %v1119_v34  ;;  %638 = vmatprep.mubr.f32.mxu1 %v72_v35 }
 0x12e   :  { %485 = vmatmul.mubr.f32.gmra.mrb[2].mxu0 %v71_v36 }
 0x12f   :  { %709 = vmatprep.mubr.f32.mxu0 %v1256_v14 }
 0x130   :  { %639 = vmatmul.mubr.f32.gmra.mrb[2].mxu1 %v71_v36 }
 0x131   :  { %784 = vmatprep.mubr.f32.mxu1 %v1268_v27 }
 0x132   :  { %710 = vmatmul.mubr.f32.vlgmr.msra.gmra.mrb[4].mxu0 %v1260_v17 }
 0x133   :  { %714 = vmatprep.mubr.f32.mxu0 %v1263_v22 }
 0x134   :  { %785 = vmatmul.mubr.f32.vlgmr.msra.gmra.mrb[4].mxu1 %v67_v32 }
 0x135   :  { %789 = vmatprep.mubr.f32.mxu1 %v72_v35 }
 0x136   :  { %715 = vmatmul.mubr.f32.gmra.mrb[6].mxu0 %v1266_v24 }
 0x138   :  { %790 = vmatmul.mubr.f32.gmra.mrb[6].mxu1 %v71_v36 }
 0x1fd   :  { %v480_v38 = vpop.f32.mrb[0].mxu0 }
 0x1fe   :  { %v482_v14 = vpop.f32.mrb[1].mxu0  ;;  %829 = vst [vmem:[#allocation8] sm:$0xff] %v480_v38 }
 0x1ff   :  { %v634_v39 = vpop.f32.mrb[0].mxu1  ;;  %830 = vst [vmem:[#allocation8 + $0x8] sm:$0xff] %v482_v14 }
 0x200   :  { %v636_v40 = vpop.f32.mrb[1].mxu1  ;;  %831 = vst [vmem:[#allocation8 + $0x10] sm:$0xff] %v634_v39 }
 0x201   :  { %v486_v17 = vpop.f32.mrb[2].mxu0  ;;  %832 = vst [vmem:[#allocation8 + $0x18] sm:$0xff] %v636_v40 }
 0x202   :  { %v488_v27 = vpop.f32.mrb[3].mxu0  ;;  %834 = vst [vmem:[#allocation8 + $0x28] sm:$0xff] %v486_v17 }
 0x203   :  { %v640_v22 = vpop.f32.mrb[2].mxu1  ;;  %835 = vst [vmem:[#allocation8 + $0x30] sm:$0xff] %v488_v27 }
 0x204   :  { %v642_v41 = vpop.f32.mrb[3].mxu1  ;;  %836 = vst [vmem:[#allocation8 + $0x38] sm:$0xff] %v640_v22 }
 0x205   :  { %v711_v24 = vpop.f32.mrb[4].mxu0  ;;  %837 = vst [vmem:[#allocation8 + $0x40] sm:$0xff] %v642_v41 }
 0x206   :  { %v713_v44 = vpop.f32.mrb[5].mxu0 }
 0x207   :  { %v786_v43 = vpop.f32.mrb[4].mxu1 }
 0x208   :  { %v787_v45 = vadd.f32 %v786_v43, %v711_v24  ;;  %v788_v46 = vpop.f32.mrb[5].mxu1 }
 0x209   :  { %v716_v48 = vpop.f32.mrb[6].mxu0 }
 0x20a   :  { %v799_v47 = vadd.f32 %v787_v45, %v59_v42  ;;  %v718_v51 = vpop.f32.mrb[7].mxu0 }
 0x20b   :  { %v791_v50 = vpop.f32.mrb[6].mxu1 }
 0x20c   :  { %810 = vst.msk [vmem:[#allocation2 + $0x20] sm:$0xff] %vm48_vm0, %v799_v47  ;;  %v792_v52 = vadd.f32 %v791_v50, %v716_v48  ;;  %v793_v53 = vpop.f32.mrb[7].mxu1 }
 0x20e   :  { %v804_v54 = vadd.f32 %v792_v52, %v64_v49 }
 0x210   :  { %815 = vst.msk [vmem:[#allocation2 + $0x48] sm:$0xff] %vm48_vm0, %v804_v54 }
 0x213   :  { %v823_v55 = vld [vmem:[#allocation2 + $0x20] sm:$0xff] }
 0x214   :  { %833 = vst.msk [vmem:[#allocation8 + $0x20] sm:$0xff] %vm48_vm0, %v823_v55 }
 0x217   :  { %v828_v56 = vld [vmem:[#allocation2 + $0x48] sm:$0xff] }
 0x218   :  { %838 = vst.msk [vmem:[#allocation8 + $0x48] sm:$0xff] %vm48_vm0, %v828_v56 }
 0x219   :  { %1192 = shalt.err (!%p1189_p6)
}
 0x21a   :  { %s1193_s10 = scalar_lea.hbm %s1301_s2, 1280 }
 0x21b   :  { %p1194_p7 = scmp.ne.s32.totalorder %s1301_s2, %s1193_s10  ;;  %p1197_p8 = scmp.lt.u32.totalorder %s1193_s10, %s1301_s2 }
 0x21d   :  { %p1199_p9 = pnand %p1197_p8, %p1194_p7 }
 0x21f   :  { %1202 = shalt.err (!%p1199_p9)
}
 0x220   :  { %s1215_s15 = smov 640   ;;  %s1216_s16 = smov 40  }
 0x221   :  { %850 = dma.vmem_to_hbm [thread:$0]  %s845_s6, 1280, %s1301_s2, [#allocation5], %s1215_s15, %s1215_s15, %s1216_s16  }
 0x222   :  { %1207 = dma.done.wait [#allocation5], 1280  }
 0x223   :  { %1208 = vsyncadd [#allocation5], 4294966016 }
 0x224   :  { %854 = vsyncpa [#allocation4], 1 }
 0x225   :  { %855 = vsyncpa [#allocation7], 1 }
 0x226   :  { %856 = vsyncpa [#allocation5], 1 }

</bundles_post_ra>
